<compile_context>
chip_gen: v5e
topology: v5e:2x2
jax: 0.10.0
libtpu: 0.0.40
codegen_flags: <defaults>
</compile_context>

<pallas_src>
import functools

import jax
import jax.numpy as jnp
from jax.experimental import pallas as pl
from jax.experimental.pallas import tpu as pltpu


_VMEM_TILE_BUDGET = 48 * 1024 * 1024   # tile-selection budget, safe on v5e/v6e/v7x
_VMEM_LIMIT_BYTES = 64 * 1024 * 1024   # raised scoped-VMEM limit for the compiler


def _bert_output_kernel(x_ref, w_ref, res_ref, params_ref, o_ref, *, eps):
    # Full-K matmul for this row block; MXU accumulates in f32.
    acc = jnp.dot(x_ref[...], w_ref[...], preferred_element_type=jnp.float32)

    # bias + residual (f32), then LayerNorm over the full hidden dim.
    bias = params_ref[0:1, :]
    gamma = params_ref[1:2, :]
    beta = params_ref[2:3, :]

    h = acc + bias + res_ref[...].astype(jnp.float32)
    mean = jnp.mean(h, axis=-1, keepdims=True)
    centered = h - mean
    var = jnp.mean(centered * centered, axis=-1, keepdims=True)
    normed = centered * jax.lax.rsqrt(var + eps)
    out = normed * gamma + beta
    o_ref[...] = out.astype(o_ref.dtype)


def _round_up(x, m):
    return ((x + m - 1) // m) * m


def bert_output_pallas(hidden_states, input_tensor, weight, bias, gamma, beta,
                       *, eps=1e-12, use_bf16_matmul=True):
    """Fused BertOutput forward: LayerNorm(hidden_states @ W + b + input_tensor).

    hidden_states: (..., K)   activations from BertIntermediate
    input_tensor : (..., N)   residual input
    weight       : (K, N)     (transpose of torch nn.Linear.weight)
    bias, gamma, beta: (N,)
    Dropout is applied in eval mode (identity).
    """
    K = hidden_states.shape[-1]
    N = weight.shape[-1]
    assert weight.shape[0] == K
    orig_shape = input_tensor.shape
    out_dtype = input_tensor.dtype

    x = hidden_states.reshape(-1, K)
    res = input_tensor.reshape(-1, N)
    M = x.shape[0]

    if use_bf16_matmul:
        x = x.astype(jnp.bfloat16)
        w = weight.astype(jnp.bfloat16)
    else:
        w = weight

    xsz = jnp.dtype(x.dtype).itemsize
    wsz = jnp.dtype(w.dtype).itemsize
    rsz = jnp.dtype(res.dtype).itemsize
    osz = jnp.dtype(out_dtype).itemsize

    def vmem_estimate(tm):
        # double-buffered x/res/out blocks + 2x weight buffers (resident block)
        # + params padded to an 8-sublane tile.
        return (2 * tm * K * xsz + 2 * K * N * wsz
                + 2 * tm * N * rsz + 2 * tm * N * osz + 8 * N * 4)

    # Prefer big row tiles (512), shrink (keeping a multiple of 8) only if the
    # VMEM estimate exceeds the cross-generation budget.
    tm = min(512, _round_up(M, 8))
    while tm > 8 and vmem_estimate(tm) > _VMEM_TILE_BUDGET:
        tm = max(8, (tm // 2) // 8 * 8)

    M_pad = _round_up(M, tm)
    if M_pad != M:
        x = jnp.pad(x, ((0, M_pad - M), (0, 0)))
        res = jnp.pad(res, ((0, M_pad - M), (0, 0)))

    # Pack bias / gamma / beta into one (3, N) f32 block (single DMA).
    params = jnp.stack([bias.astype(jnp.float32),
                        gamma.astype(jnp.float32),
                        beta.astype(jnp.float32)], axis=0)

    grid = (M_pad // tm,)
    kernel = functools.partial(_bert_output_kernel, eps=eps)

    out = pl.pallas_call(
        kernel,
        out_shape=jax.ShapeDtypeStruct((M_pad, N), out_dtype),
        grid_spec=pltpu.PrefetchScalarGridSpec(
            num_scalar_prefetch=0,
            grid=grid,
            in_specs=[
                pl.BlockSpec((tm, K), lambda i: (i, 0)),   # activation row block
                pl.BlockSpec((K, N), lambda i: (0, 0)),    # weight, VMEM-resident
                pl.BlockSpec((tm, N), lambda i: (i, 0)),   # residual row block
                pl.BlockSpec((3, N), lambda i: (0, 0)),    # packed bias/gamma/beta
            ],
            out_specs=pl.BlockSpec((tm, N), lambda i: (i, 0)),
        ),
        compiler_params=pltpu.CompilerParams(
            dimension_semantics=("parallel",),
            vmem_limit_bytes=_VMEM_LIMIT_BYTES,
        ),
    )(x, w, res, params)

    if M_pad != M:
        out = out[:M]
    return out.reshape(orig_shape)


def _reference(hidden_states, input_tensor, weight, bias, gamma, beta,
               eps=1e-12, matmul_dtype=None):
    if matmul_dtype is not None:
        h = jnp.dot(hidden_states.astype(matmul_dtype),
                    weight.astype(matmul_dtype),
                    preferred_element_type=jnp.float32)
    else:
        h = hidden_states @ weight
    h = h + bias + input_tensor
    mean = h.mean(-1, keepdims=True)
    var = ((h - mean) ** 2).mean(-1, keepdims=True)
    return (h - mean) / jnp.sqrt(var + eps) * gamma + beta


if __name__ == "__main__":
    key = jax.random.PRNGKey(0)
    batch, seq = 2, 8
    intermediate_size, hidden_size = 512, 256

    k1, k2, k3, k4, k5, k6 = jax.random.split(key, 6)
    hidden_states = jax.random.normal(
        k1, (batch, seq, intermediate_size), dtype=jnp.float32)
    input_tensor = jax.random.normal(
        k2, (batch, seq, hidden_size), dtype=jnp.float32)
    weight = 0.02 * jax.random.normal(
        k3, (intermediate_size, hidden_size), dtype=jnp.float32)
    bias = 0.02 * jax.random.normal(k4, (hidden_size,), dtype=jnp.float32)
    gamma = 1.0 + 0.1 * jax.random.normal(k5, (hidden_size,), dtype=jnp.float32)
    beta = 0.1 * jax.random.normal(k6, (hidden_size,), dtype=jnp.float32)

    y = bert_output_pallas(hidden_states, input_tensor, weight, bias,
                           gamma, beta)
    jax.block_until_ready(y)

    assert y.shape == input_tensor.shape and y.dtype == input_tensor.dtype

    # Tight check against a precision-matched reference (bf16 MXU, f32 accum).
    y_ref_bf16 = _reference(hidden_states, input_tensor, weight, bias,
                            gamma, beta, matmul_dtype=jnp.bfloat16)
    err_tight = float(jnp.max(jnp.abs(y - y_ref_bf16)))
    assert jnp.allclose(y, y_ref_bf16, atol=2e-3, rtol=2e-3), err_tight

    # Loose sanity check against the full-f32 reference (bf16 matmul rounding).
    y_ref_f32 = _reference(hidden_states, input_tensor, weight, bias,
                           gamma, beta)
    err_loose = float(jnp.max(jnp.abs(y - y_ref_f32)))
    assert jnp.allclose(y, y_ref_f32, atol=6e-2, rtol=6e-2), err_loose

    print("KERNEL_OK")
</pallas_src>

<mosaic_0001>
module attributes {stable_mosaic.version = 11 : i64} {
  func.func @_bert_output_kernel(%arg0: i32, %arg1: memref<16x512xbf16, #tpu.memory_space<vmem>>, %arg2: memref<512x256xbf16, #tpu.memory_space<vmem>>, %arg3: memref<16x256xf32, #tpu.memory_space<vmem>>, %arg4: memref<3x256xf32, #tpu.memory_space<vmem>>, %arg5: memref<16x256xf32, #tpu.memory_space<vmem>>) attributes {dimension_semantics = [#tpu.dimension_semantics<parallel>], iteration_bounds = array<i64: 1>, scalar_prefetch = 0 : i64, scratch_operands = 0 : i64, tpu.core_type = #tpu.core_type<tc>, window_params = [{transform_indices = @transform_0, window_bounds = array<i64: 16, 512>}, {pipeline_mode = #tpu.pipeline_mode<synchronous>, transform_indices = @transform_1, window_bounds = array<i64: 512, 256>}, {transform_indices = @transform_2, window_bounds = array<i64: 16, 256>}, {pipeline_mode = #tpu.pipeline_mode<synchronous>, transform_indices = @transform_3, window_bounds = array<i64: 3, 256>}, {transform_indices = @transform_4, window_bounds = array<i64: 16, 256>}]} {
    %c0 = arith.constant 0 : index
    %c0_0 = arith.constant 0 : index
    %0 = vector.load %arg1[%c0, %c0_0] : memref<16x512xbf16, #tpu.memory_space<vmem>>, vector<16x512xbf16>
    %c0_1 = arith.constant 0 : index
    %c0_2 = arith.constant 0 : index
    %1 = vector.load %arg2[%c0_1, %c0_2] : memref<512x256xbf16, #tpu.memory_space<vmem>>, vector<512x256xbf16>
    %cst = arith.constant dense<0.000000e+00> : vector<16x256xf32>
    %2 = tpu.matmul %0, %1, %cst {dimension_numbers = #tpu.dot_dimension_numbers<[1], [0], [0], [1], [0, 0, 1, 1], [], []>} : vector<16x512xbf16>, vector<512x256xbf16>, vector<16x256xf32> -> vector<16x256xf32>
    %c0_3 = arith.constant 0 : index
    %c0_4 = arith.constant 0 : index
    %3 = vector.load %arg4[%c0_3, %c0_4] : memref<3x256xf32, #tpu.memory_space<vmem>>, vector<1x256xf32>
    %c1 = arith.constant 1 : index
    %c0_5 = arith.constant 0 : index
    %4 = vector.load %arg4[%c1, %c0_5] : memref<3x256xf32, #tpu.memory_space<vmem>>, vector<1x256xf32>
    %c2 = arith.constant 2 : index
    %c0_6 = arith.constant 0 : index
    %5 = vector.load %arg4[%c2, %c0_6] : memref<3x256xf32, #tpu.memory_space<vmem>>, vector<1x256xf32>
    %6 = vector.broadcast %3 : vector<1x256xf32> to vector<16x256xf32>
    %7 = arith.addf %2, %6 : vector<16x256xf32>
    %c0_7 = arith.constant 0 : index
    %c0_8 = arith.constant 0 : index
    %8 = vector.load %arg3[%c0_7, %c0_8] : memref<16x256xf32, #tpu.memory_space<vmem>>, vector<16x256xf32>
    %9 = arith.addf %7, %8 : vector<16x256xf32>
    %cst_9 = arith.constant dense<0.000000e+00> : vector<16xf32>
    %10 = vector.multi_reduction <add>, %9, %cst_9 [1] : vector<16x256xf32> to vector<16xf32>
    %11 = vector.shape_cast %10 : vector<16xf32> to vector<16x1xf32>
    %cst_10 = arith.constant 2.560000e+02 : f32
    %12 = vector.broadcast %cst_10 : f32 to vector<16x1xf32>
    %13 = arith.divf %11, %12 : vector<16x1xf32>
    %14 = vector.broadcast %13 : vector<16x1xf32> to vector<16x256xf32>
    %15 = arith.subf %9, %14 : vector<16x256xf32>
    %16 = arith.mulf %15, %15 : vector<16x256xf32>
    %cst_11 = arith.constant dense<0.000000e+00> : vector<16xf32>
    %17 = vector.multi_reduction <add>, %16, %cst_11 [1] : vector<16x256xf32> to vector<16xf32>
    %18 = vector.shape_cast %17 : vector<16xf32> to vector<16x1xf32>
    %cst_12 = arith.constant 2.560000e+02 : f32
    %19 = vector.broadcast %cst_12 : f32 to vector<16x1xf32>
    %20 = arith.divf %18, %19 : vector<16x1xf32>
    %cst_13 = arith.constant 9.99999996E-13 : f32
    %21 = vector.broadcast %cst_13 : f32 to vector<16x1xf32>
    %22 = arith.addf %20, %21 : vector<16x1xf32>
    %23 = math.rsqrt %22 : vector<16x1xf32>
    %24 = vector.broadcast %23 : vector<16x1xf32> to vector<16x256xf32>
    %25 = arith.mulf %15, %24 : vector<16x256xf32>
    %26 = vector.broadcast %4 : vector<1x256xf32> to vector<16x256xf32>
    %27 = arith.mulf %25, %26 : vector<16x256xf32>
    %28 = vector.broadcast %5 : vector<1x256xf32> to vector<16x256xf32>
    %29 = arith.addf %27, %28 : vector<16x256xf32>
    %c0_14 = arith.constant 0 : index
    %c0_15 = arith.constant 0 : index
    %30 = vector.load %arg5[%c0_14, %c0_15] : memref<16x256xf32, #tpu.memory_space<vmem>>, vector<16x256xf32>
    tpu.vector_store %arg5[%c0_14, %c0_15], %29 {strides = array<i32>} : memref<16x256xf32, #tpu.memory_space<vmem>>, vector<16x256xf32>,
    return
  }
  func.func @transform_0(%arg0: i32) -> (i32, i32) {
    %c0_i32 = arith.constant 0 : i32
    %c0_i32_0 = arith.constant 0 : i32
    return %arg0, %c0_i32 : i32, i32
  }
  func.func @transform_1(%arg0: i32) -> (i32, i32) {
    %c0_i32 = arith.constant 0 : i32
    %c0_i32_0 = arith.constant 0 : i32
    %c0_i32_1 = arith.constant 0 : i32
    return %c0_i32, %c0_i32_0 : i32, i32
  }
  func.func @transform_2(%arg0: i32) -> (i32, i32) {
    %c0_i32 = arith.constant 0 : i32
    %c0_i32_0 = arith.constant 0 : i32
    return %arg0, %c0_i32 : i32, i32
  }
  func.func @transform_3(%arg0: i32) -> (i32, i32) {
    %c0_i32 = arith.constant 0 : i32
    %c0_i32_0 = arith.constant 0 : i32
    %c0_i32_1 = arith.constant 0 : i32
    return %c0_i32, %c0_i32_0 : i32, i32
  }
  func.func @transform_4(%arg0: i32) -> (i32, i32) {
    %c0_i32 = arith.constant 0 : i32
    %c0_i32_0 = arith.constant 0 : i32
    return %arg0, %c0_i32 : i32, i32
  }
}

</mosaic_0001>

<bundles_post_ra>
// kernel: tpu_custom_call.1
= control target key start
LH: loop header
LB: loop body
LE: loop exit
PB: predicated region body
PF: predicated region fallthrough
CT: control target
= control target key end

     0   :  { %9 = vsyncpa [#allocation3], 0  ;;  %s1276_s0 = inlined_call_operand.hbm [shape: bf16[16,512], index: 0, kind: input, shape index: {}]   ;;  %s1277_s1 = inlined_call_operand.hbm [shape: bf16[512,256], index: 1, kind: input, shape index: {}]   ;;  %s1278_s2 = inlined_call_operand.hbm [shape: f32[16,256], index: 2, kind: input, shape index: {}]   ;;  %s1279_s3 = inlined_call_operand.hbm [shape: f32[3,256], index: 3, kind: input, shape index: {}]   ;;  %s1280_s4 = inlined_call_operand.hbm [shape: f32[16,256], index: 4, kind: output, shape index: {}]  }
   0x1   :  { %10 = vsyncpa [#allocation6], 0 }
   0x2   :  { %11 = vsyncpa [#allocation9], 0  ;;  %s30_s17 = sshll.u32 %s1277_s1, 4  ;;  %s31_s17 = int_to_ptr.hbm [resolvable:$true] %s30_s17 }
   0x3   :  { %12 = vsyncpa [#allocation4], 0  ;;  %s1201_s18 = smov [#allocation5]   ;;  %s17_s22 = sshll.u32 %s1276_s0, 4  ;;  %s18_s22 = int_to_ptr.hbm [resolvable:$true] %s17_s22 }
   0x4   :  { %s32_s19 = sshll.u32 %s1201_s18, 4  ;;  %s1202_s23 = smov 128   ;;  %s33_s19 = int_to_ptr.vmem [resolvable:$true] %s32_s19 }
   0x5   :  { %s1203_s24 = smov 8   ;;  %s1204_s25 = smov [#allocation2]  }
   0x6   :  { %38 = dma.hbm_to_vmem [thread:$0]  %s31_s17, 8192, %s33_s19, [#allocation6], %s1202_s23, %s1202_s23, %s1203_s24  }
   0x7   :  { %s19_s26 = sshll.u32 %s1204_s25, 4  ;;  %s1205_s27 = smov 256   ;;  %s20_s26 = int_to_ptr.vmem [resolvable:$true] %s19_s26 }
   0x8   :  { %s1206_s28 = smov 16   ;;  %s43_s30 = sshll.u32 %s1278_s2, 4  ;;  %s44_s30 = int_to_ptr.hbm [resolvable:$true] %s43_s30 }
   0x9   :  { %25 = dma.hbm_to_vmem [thread:$0]  %s18_s22, 512, %s20_s26, [#allocation3], %s1205_s27, %s1205_s27, %s1206_s28  }
   0xa   :  { %s1207_s5 = smov [#allocation7]   ;;  %s57_s8 = sshll.u32 %s1279_s3, 4  ;;  %s58_s8 = int_to_ptr.hbm [resolvable:$true] %s57_s8 }
   0xb   :  { %s45_s0 = sshll.u32 %s1207_s5, 4  ;;  %s1208_s9 = smov [#allocation8]   ;;  %s46_s0 = int_to_ptr.vmem [resolvable:$true] %s45_s0 }
   0xc   :  { %51 = dma.hbm_to_vmem [thread:$0]  %s44_s30, 512, %s46_s0, [#allocation6], %s1205_s27, %s1205_s27, %s1206_s28  }
   0xd   :  { %s59_s10 = sshll.u32 %s1208_s9, 4  ;;  %s60_s10 = int_to_ptr.vmem [resolvable:$true] %s59_s10 }
   0xe   :  { %62 = dma.hbm_to_vmem [thread:$0]  %s58_s8, 128, %s60_s10, [#allocation9]  }
   0xf   :  { %1193 = dma.done.wait [#allocation3], 512  }
  0x10   :  { %1194 = vsyncadd [#allocation3], 4294966784 }
  0x11   :  { %1195 = dma.done.wait [#allocation6], 8704  }
  0x12   :  { %1196 = vsyncadd [#allocation6], 4294958592 }
  0x13   :  { %1197 = dma.done.wait [#allocation9], 128  }
  0x14   :  { %1198 = vsyncadd [#allocation9], 4294967168  ;;  %v791_v0 = vld [vmem:[#allocation5 + $0x70] sm:$0xf]  ;;  %v1008_v1 = vld [vmem:[#allocation5 + $0x74] sm:$0xf0] }
  0x15   :  { %v855_v2 = vld [vmem:[#allocation5 + $0xf0] sm:$0xf]  ;;  %v792_v3 = vor.u32 %v1008_v1, %v791_v0  ;;  %v1024_v4 = vld [vmem:[#allocation5 + $0xf4] sm:$0xf0]  ;;  %v783_v11 = vld [vmem:[#allocation5 + $0x60] sm:$0xf] }
  0x16   :  { %v919_v5 = vld [vmem:[#allocation5 + $0x170] sm:$0xf]  ;;  %v1040_v6 = vld [vmem:[#allocation5 + $0x174] sm:$0xf0]  ;;  %v856_v7 = vor.u32 %v1024_v4, %v855_v2  ;;  %v1006_v13 = vld [vmem:[#allocation5 + $0x64] sm:$0xf0] }
  0x17   :  { %v920_v8 = vor.u32 %v1040_v6, %v919_v5  ;;  %v983_v9 = vld [vmem:[#allocation5 + $0x1f0] sm:$0xf]  ;;  %v1056_v10 = vld [vmem:[#allocation5 + $0x1f4] sm:$0xf0]  ;;  %497 = vmatpush.bf16.msra.mxu0 %v792_v3  ;;  %v847_v14 = vld [vmem:[#allocation5 + $0xe0] sm:$0xf]  ;;  %v784_v16 = vor.u32 %v1006_v13, %v783_v11 }
  0x18   :  { %v984_v12 = vor.u32 %v1056_v10, %v983_v9  ;;  %v1022_v15 = vld [vmem:[#allocation5 + $0xe4] sm:$0xf0]  ;;  %511 = vmatpush.bf16.msra.mxu1 %v856_v7  ;;  %v911_v18 = vld [vmem:[#allocation5 + $0x160] sm:$0xf]  ;;  %v775_v23 = vld [vmem:[#allocation5 + $0x50] sm:$0xf] }
  0x19   :  { %525 = vmatpush.bf16.msra.mxu2 %v920_v8  ;;  %v848_v17 = vor.u32 %v1022_v15, %v847_v14  ;;  %v1038_v19 = vld [vmem:[#allocation5 + $0x164] sm:$0xf0]  ;;  %v975_v20 = vld [vmem:[#allocation5 + $0x1e0] sm:$0xf]  ;;  %v1004_v24 = vld [vmem:[#allocation5 + $0x54] sm:$0xf0] }
  0x1a   :  { %539 = vmatpush.bf16.msra.mxu3 %v984_v12  ;;  %v912_v21 = vor.u32 %v1038_v19, %v911_v18  ;;  %v1054_v22 = vld [vmem:[#allocation5 + $0x1e4] sm:$0xf0]  ;;  %v839_v26 = vld [vmem:[#allocation5 + $0xd0] sm:$0xf]  ;;  %v1020_v27 = vld [vmem:[#allocation5 + $0xd4] sm:$0xf0]  ;;  %v776_v29 = vor.u32 %v1004_v24, %v775_v23 }
  0x1b   :  { %v976_v25 = vor.u32 %v1054_v22, %v975_v20  ;;  %v903_v28 = vld [vmem:[#allocation5 + $0x150] sm:$0xf]  ;;  %498 = vmatpush.bf16.msra.mxu0 %v784_v16  ;;  %v1036_v30 = vld [vmem:[#allocation5 + $0x154] sm:$0xf0]  ;;  %v840_v33 = vor.u32 %v1020_v27, %v839_v26  ;;  %v767_v35 = vld [vmem:[#allocation5 + $0x40] sm:$0xf] }
  0x1c   :  { %v967_v31 = vld [vmem:[#allocation5 + $0x1d0] sm:$0xf]  ;;  %v1052_v32 = vld [vmem:[#allocation5 + $0x1d4] sm:$0xf0]  ;;  %512 = vmatpush.bf16.msra.mxu1 %v848_v17  ;;  %v904_v34 = vor.u32 %v1036_v30, %v903_v28  ;;  %v1002_v36 = vld [vmem:[#allocation5 + $0x44] sm:$0xf0] }
  0x1d   :  { %526 = vmatpush.bf16.msra.mxu2 %v912_v21  ;;  %v831_v37 = vld [vmem:[#allocation5 + $0xc0] sm:$0xf]  ;;  %v968_v38 = vor.u32 %v1052_v32, %v967_v31  ;;  %v1018_v39 = vld [vmem:[#allocation5 + $0xc4] sm:$0xf0]  ;;  %v768_v44 = vor.u32 %v1002_v36, %v767_v35  ;;  %v759_v47 = vld [vmem:[#allocation5 + $0x30] sm:$0xf] }
  0x1e   :  { %540 = vmatpush.bf16.msra.mxu3 %v976_v25  ;;  %v895_v40 = vld [vmem:[#allocation5 + $0x140] sm:$0xf]  ;;  %v1034_v41 = vld [vmem:[#allocation5 + $0x144] sm:$0xf0]  ;;  %v832_v45 = vor.u32 %v1018_v39, %v831_v37  ;;  %v1000_v48 = vld [vmem:[#allocation5 + $0x34] sm:$0xf0] }
  0x1f   :  { %v959_v42 = vld [vmem:[#allocation5 + $0x1c0] sm:$0xf]  ;;  %v1050_v43 = vld [vmem:[#allocation5 + $0x1c4] sm:$0xf0]  ;;  %499 = vmatpush.bf16.msra.mxu0 %v776_v29  ;;  %v896_v46 = vor.u32 %v1034_v41, %v895_v40  ;;  %v823_v49 = vld [vmem:[#allocation5 + $0xb0] sm:$0xf]  ;;  %v760_v56 = vor.u32 %v1000_v48, %v759_v47 }
  0x20   :  { %513 = vmatpush.bf16.msra.mxu1 %v840_v33  ;;  %v960_v50 = vor.u32 %v1050_v43, %v959_v42  ;;  %v1016_v51 = vld [vmem:[#allocation5 + $0xb4] sm:$0xf0]  ;;  %v887_v52 = vld [vmem:[#allocation5 + $0x130] sm:$0xf]  ;;  %v751_v59 = vld [vmem:[#allocation5 + $0x20] sm:$0xf] }
  0x21   :  { %527 = vmatpush.bf16.msra.mxu2 %v904_v34  ;;  %v1032_v53 = vld [vmem:[#allocation5 + $0x134] sm:$0xf0]  ;;  %v951_v54 = vld [vmem:[#allocation5 + $0x1b0] sm:$0xf]  ;;  %v824_v57 = vor.u32 %v1016_v51, %v823_v49  ;;  %v998_v60 = vld [vmem:[#allocation5 + $0x24] sm:$0xf0] }
  0x22   :  { %541 = vmatpush.bf16.msra.mxu3 %v968_v38  ;;  %v1048_v55 = vld [vmem:[#allocation5 + $0x1b4] sm:$0xf0]  ;;  %v888_v58 = vor.u32 %v1032_v53, %v887_v52  ;;  %v815_v61 = vld [vmem:[#allocation5 + $0xa0] sm:$0xf]  ;;  %v1014_v63 = vld [vmem:[#allocation5 + $0xa4] sm:$0xf0]  ;;  %v752_v4 = vor.u32 %v998_v60, %v751_v59 }
  0x23   :  { %500 = vmatpush.bf16.msra.mxu0 %v768_v44  ;;  %v952_v62 = vor.u32 %v1048_v55, %v951_v54  ;;  %v879_v0 = vld [vmem:[#allocation5 + $0x120] sm:$0xf]  ;;  %v1030_v1 = vld [vmem:[#allocation5 + $0x124] sm:$0xf0]  ;;  %v816_v5 = vor.u32 %v1014_v63, %v815_v61  ;;  %v743_v7 = vld [vmem:[#allocation5 + $0x10] sm:$0xf] }
  0x24   :  { %514 = vmatpush.bf16.msra.mxu1 %v832_v45  ;;  %v943_v2 = vld [vmem:[#allocation5 + $0x1a0] sm:$0xf]  ;;  %v1046_v3 = vld [vmem:[#allocation5 + $0x1a4] sm:$0xf0]  ;;  %v880_v6 = vor.u32 %v1030_v1, %v879_v0  ;;  %v996_v8 = vld [vmem:[#allocation5 + $0x14] sm:$0xf0] }
  0x25   :  { %528 = vmatpush.bf16.msra.mxu2 %v896_v46  ;;  %v807_v9 = vld [vmem:[#allocation5 + $0x90] sm:$0xf]  ;;  %v944_v10 = vor.u32 %v1046_v3, %v943_v2  ;;  %v1012_v11 = vld [vmem:[#allocation5 + $0x94] sm:$0xf0]  ;;  %v735_v16 = vld [vmem:[#allocation5] sm:$0xf]  ;;  %v744_v17 = vor.u32 %v996_v8, %v743_v7 }
  0x26   :  { %542 = vmatpush.bf16.msra.mxu3 %v960_v50  ;;  %v871_v12 = vld [vmem:[#allocation5 + $0x110] sm:$0xf]  ;;  %v1028_v13 = vld [vmem:[#allocation5 + $0x114] sm:$0xf0]  ;;  %v994_v18 = vld [vmem:[#allocation5 + $0x4] sm:$0xf0]  ;;  %v808_v21 = vor.u32 %v1012_v11, %v807_v9 }
  0x27   :  { %501 = vmatpush.bf16.msra.mxu0 %v760_v56  ;;  %v935_v14 = vld [vmem:[#allocation5 + $0x190] sm:$0xf]  ;;  %v1044_v15 = vld [vmem:[#allocation5 + $0x194] sm:$0xf0]  ;;  %v799_v19 = vld [vmem:[#allocation5 + $0x80] sm:$0xf]  ;;  %v872_v22 = vor.u32 %v1028_v13, %v871_v12  ;;  %v736_v33 = vor.u32 %v994_v18, %v735_v16 }
  0x28   :  { %515 = vmatpush.bf16.msra.mxu1 %v824_v57  ;;  %v1010_v20 = vld [vmem:[#allocation5 + $0x84] sm:$0xf0]  ;;  %v863_v23 = vld [vmem:[#allocation5 + $0x100] sm:$0xf]  ;;  %v936_v26 = vor.u32 %v1044_v15, %v935_v14  ;;  %v1007_v28 = vld [vmem:[#allocation5 + $0x74] sm:$0xf] }
  0x29   :  { %529 = vmatpush.bf16.msra.mxu2 %v888_v58  ;;  %v1026_v24 = vld [vmem:[#allocation5 + $0x104] sm:$0xf0]  ;;  %v927_v25 = vld [vmem:[#allocation5 + $0x180] sm:$0xf]  ;;  %v793_v29 = vld [vmem:[#allocation5 + $0x78] sm:$0xf0]  ;;  %v800_v37 = vor.u32 %v1010_v20, %v799_v19 }
  0x2a   :  { %543 = vmatpush.bf16.msra.mxu3 %v952_v62  ;;  %v1042_v27 = vld [vmem:[#allocation5 + $0x184] sm:$0xf0]  ;;  %v1023_v30 = vld [vmem:[#allocation5 + $0xf4] sm:$0xf]  ;;  %v857_v31 = vld [vmem:[#allocation5 + $0xf8] sm:$0xf0]  ;;  %v864_v38 = vor.u32 %v1026_v24, %v863_v23  ;;  %v796_v44 = vor.u32 %v1007_v28, %v793_v29 }
  0x2b   :  { %502 = vmatpush.bf16.msra.mxu0 %v752_v4  ;;  %v1039_v32 = vld [vmem:[#allocation5 + $0x174] sm:$0xf]  ;;  %v921_v34 = vld [vmem:[#allocation5 + $0x178] sm:$0xf0]  ;;  %v1005_v39 = vld [vmem:[#allocation5 + $0x64] sm:$0xf]  ;;  %v928_v43 = vor.u32 %v1042_v27, %v927_v25  ;;  %v860_v49 = vor.u32 %v1023_v30, %v857_v31 }
  0x2c   :  { %516 = vmatpush.bf16.msra.mxu1 %v816_v5  ;;  %v1055_v35 = vld [vmem:[#allocation5 + $0x1f4] sm:$0xf]  ;;  %v985_v36 = vld [vmem:[#allocation5 + $0x1f8] sm:$0xf0]  ;;  %v785_v40 = vld [vmem:[#allocation5 + $0x68] sm:$0xf0]  ;;  %v924_v50 = vor.u32 %v1039_v32, %v921_v34 }
  0x2d   :  { %530 = vmatpush.bf16.msra.mxu2 %v880_v6  ;;  %v727_v41 = vld [vmem:[#allocation2 + $0x8] sm:$0xf]  ;;  %v992_v42 = vld [vmem:[#allocation2 + $0x14] sm:$0xf0]  ;;  %v1021_v45 = vld [vmem:[#allocation5 + $0xe4] sm:$0xf]  ;;  %v988_v54 = vor.u32 %v1055_v35, %v985_v36  ;;  %v788_v63 = vor.u32 %v1005_v39, %v785_v40 }
  0x2e   :  { %544 = vmatpush.bf16.msra.mxu3 %v944_v10  ;;  %v849_v46 = vld [vmem:[#allocation5 + $0xe8] sm:$0xf0]  ;;  %v1037_v47 = vld [vmem:[#allocation5 + $0x164] sm:$0xf]  ;;  %v719_v51 = vld [vmem:[#allocation2] sm:$0xf]  ;;  %v1254_v55 = vor.u32 %v992_v42, %v727_v41 }
  0x2f   :  { %503 = vmatpush.bf16.msra.mxu0 %v744_v17  ;;  %v913_v48 = vld [vmem:[#allocation5 + $0x168] sm:$0xf0]  ;;  %v991_v52 = vld [vmem:[#allocation2 + $0xc] sm:$0xf0]  ;;  %v729_v56 = vld [vmem:[#allocation2 + $0x18] sm:$0xf0]  ;;  %v852_v1 = vor.u32 %v1021_v45, %v849_v46 }
  0x30   :  { %517 = vmatpush.bf16.msra.mxu1 %v808_v21  ;;  %v990_v53 = vld [vmem:[#allocation2 + $0xc] sm:$0xf]  ;;  %v989_v57 = vld [vmem:[#allocation2 + $0x4] sm:$0xf]  ;;  %v721_v58 = vld [vmem:[#allocation2 + $0x10] sm:$0xf0]  ;;  %v1256_v61 = vor.u32 %v991_v52, %v719_v51  ;;  %v916_v2 = vor.u32 %v1037_v47, %v913_v48 }
  0x31   :  { %531 = vmatpush.bf16.msra.mxu2 %v872_v22  ;;  %v1053_v59 = vld [vmem:[#allocation5 + $0x1e4] sm:$0xf]  ;;  %v977_v60 = vld [vmem:[#allocation5 + $0x1e8] sm:$0xf0]  ;;  %v1258_v62 = vor.u32 %v990_v53, %v729_v56  ;;  %v1260_v0 = vor.u32 %v989_v57, %v721_v58  ;;  %v1003_v3 = vld [vmem:[#allocation5 + $0x54] sm:$0xf] }
  0x32   :  { %545 = vmatpush.bf16.msra.mxu3 %v936_v26  ;;  %v777_v4 = vld [vmem:[#allocation5 + $0x58] sm:$0xf0]  ;;  %v1019_v5 = vld [vmem:[#allocation5 + $0xd4] sm:$0xf]  ;;  %v980_v6 = vor.u32 %v1053_v59, %v977_v60  ;;  %v1001_v15 = vld [vmem:[#allocation5 + $0x44] sm:$0xf] }
  0x33   :  { %504 = vmatpush.bf16.msra.mxu0 %v736_v33  ;;  %v841_v7 = vld [vmem:[#allocation5 + $0xd8] sm:$0xf0]  ;;  %v1035_v8 = vld [vmem:[#allocation5 + $0x154] sm:$0xf]  ;;  %v780_v12 = vor.u32 %v1003_v3, %v777_v4  ;;  %v769_v16 = vld [vmem:[#allocation5 + $0x48] sm:$0xf0] }
  0x34   :  { %518 = vmatpush.bf16.msra.mxu1 %v800_v37  ;;  %v905_v9 = vld [vmem:[#allocation5 + $0x158] sm:$0xf0]  ;;  %v1051_v10 = vld [vmem:[#allocation5 + $0x1d4] sm:$0xf]  ;;  %v844_v13 = vor.u32 %v1019_v5, %v841_v7  ;;  %v1017_v17 = vld [vmem:[#allocation5 + $0xc4] sm:$0xf]  ;;  %v772_v24 = vor.u32 %v1001_v15, %v769_v16 }
  0x35   :  { %532 = vmatpush.bf16.msra.mxu2 %v864_v38  ;;  %v969_v11 = vld [vmem:[#allocation5 + $0x1d8] sm:$0xf0]  ;;  %v908_v14 = vor.u32 %v1035_v8, %v905_v9  ;;  %v833_v19 = vld [vmem:[#allocation5 + $0xc8] sm:$0xf0]  ;;  %v1033_v20 = vld [vmem:[#allocation5 + $0x144] sm:$0xf] }
  0x36   :  { %546 = vmatpush.bf16.msra.mxu3 %v928_v43  ;;  %505 = vmatmul.bf16.vlgmr.msra.gmra.mxu0 %v1256_v61  ;;  %v972_v18 = vor.u32 %v1051_v10, %v969_v11  ;;  %v897_v21 = vld [vmem:[#allocation5 + $0x148] sm:$0xf0]  ;;  %v1049_v22 = vld [vmem:[#allocation5 + $0x1c4] sm:$0xf]  ;;  %v836_v25 = vor.u32 %v1017_v17, %v833_v19  ;;  %v999_v27 = vld [vmem:[#allocation5 + $0x34] sm:$0xf] }
  0x37   :  { %553 = vmatpush.bf16.msrb.mxu0 %v796_v44  ;;  %519 = vmatmul.bf16.vlgmr.msra.gmra.mxu1 %v1260_v0  ;;  %v961_v23 = vld [vmem:[#allocation5 + $0x1c8] sm:$0xf0]  ;;  %v900_v26 = vor.u32 %v1033_v20, %v897_v21  ;;  %v761_v28 = vld [vmem:[#allocation5 + $0x38] sm:$0xf0]  ;;  %v1015_v29 = vld [vmem:[#allocation5 + $0xb4] sm:$0xf] }
  0x38   :  { %567 = vmatpush.bf16.msrb.mxu1 %v860_v49  ;;  %533 = vmatmul.bf16.vlgmr.msra.gmra.mxu2 %v1254_v55  ;;  %v964_v30 = vor.u32 %v1049_v22, %v961_v23  ;;  %v825_v31 = vld [vmem:[#allocation5 + $0xb8] sm:$0xf0]  ;;  %v1031_v32 = vld [vmem:[#allocation5 + $0x134] sm:$0xf]  ;;  %v764_v36 = vor.u32 %v999_v27, %v761_v28  ;;  %v997_v39 = vld [vmem:[#allocation5 + $0x24] sm:$0xf] }
  0x39   :  { %581 = vmatpush.bf16.msrb.mxu2 %v924_v50  ;;  %547 = vmatmul.bf16.vlgmr.msra.gmra.mxu3 %v1258_v62  ;;  %v889_v33 = vld [vmem:[#allocation5 + $0x138] sm:$0xf0]  ;;  %v1047_v34 = vld [vmem:[#allocation5 + $0x1b4] sm:$0xf]  ;;  %v828_v37 = vor.u32 %v1015_v29, %v825_v31  ;;  %v753_v40 = vld [vmem:[#allocation5 + $0x28] sm:$0xf0] }
  0x3a   :  { %595 = vmatpush.bf16.msrb.mxu3 %v988_v54  ;;  %v953_v35 = vld [vmem:[#allocation5 + $0x1b8] sm:$0xf0]  ;;  %v892_v38 = vor.u32 %v1031_v32, %v889_v33  ;;  %v1013_v41 = vld [vmem:[#allocation5 + $0xa4] sm:$0xf]  ;;  %v817_v43 = vld [vmem:[#allocation5 + $0xa8] sm:$0xf0]  ;;  %v756_v48 = vor.u32 %v997_v39, %v753_v40 }
  0x3b   :  { %554 = vmatpush.bf16.msrb.mxu0 %v788_v63  ;;  %v956_v42 = vor.u32 %v1047_v34, %v953_v35  ;;  %v1029_v44 = vld [vmem:[#allocation5 + $0x124] sm:$0xf]  ;;  %v881_v45 = vld [vmem:[#allocation5 + $0x128] sm:$0xf0]  ;;  %v820_v49 = vor.u32 %v1013_v41, %v817_v43  ;;  %v995_v51 = vld [vmem:[#allocation5 + $0x14] sm:$0xf] }
  0x3c   :  { %568 = vmatpush.bf16.msrb.mxu1 %v852_v1  ;;  %v1045_v46 = vld [vmem:[#allocation5 + $0x1a4] sm:$0xf]  ;;  %v945_v47 = vld [vmem:[#allocation5 + $0x1a8] sm:$0xf0]  ;;  %v884_v50 = vor.u32 %v1029_v44, %v881_v45  ;;  %v745_v52 = vld [vmem:[#allocation5 + $0x18] sm:$0xf0] }
  0x3d   :  { %582 = vmatpush.bf16.msrb.mxu2 %v916_v2  ;;  %v1011_v53 = vld [vmem:[#allocation5 + $0x94] sm:$0xf]  ;;  %v948_v54 = vor.u32 %v1045_v46, %v945_v47  ;;  %v809_v56 = vld [vmem:[#allocation5 + $0x98] sm:$0xf0]  ;;  %v748_v63 = vor.u32 %v995_v51, %v745_v52  ;;  %v993_v3 = vld [vmem:[#allocation5 + $0x4] sm:$0xf] }
  0x3e   :  { %596 = vmatpush.bf16.msrb.mxu3 %v980_v6  ;;  %v1027_v57 = vld [vmem:[#allocation5 + $0x114] sm:$0xf]  ;;  %v873_v58 = vld [vmem:[#allocation5 + $0x118] sm:$0xf0]  ;;  %v812_v1 = vor.u32 %v1011_v53, %v809_v56  ;;  %v737_v4 = vld [vmem:[#allocation5 + $0x8] sm:$0xf0] }
  0x3f   :  { %555 = vmatpush.bf16.msrb.mxu0 %v780_v12  ;;  %v1043_v59 = vld [vmem:[#allocation5 + $0x194] sm:$0xf]  ;;  %v937_v60 = vld [vmem:[#allocation5 + $0x198] sm:$0xf0]  ;;  %v876_v2 = vor.u32 %v1027_v57, %v873_v58  ;;  %v1009_v5 = vld [vmem:[#allocation5 + $0x84] sm:$0xf]  ;;  %v740_v12 = vor.u32 %v993_v3, %v737_v4 }
  0x40   :  { %569 = vmatpush.bf16.msrb.mxu1 %v844_v13  ;;  %v940_v6 = vor.u32 %v1043_v59, %v937_v60  ;;  %v801_v7 = vld [vmem:[#allocation5 + $0x88] sm:$0xf0]  ;;  %v1025_v8 = vld [vmem:[#allocation5 + $0x104] sm:$0xf]  ;;  %v612_v52 = vld [vmem:[#allocation7 + $0x18] sm:$0xff]  ;;  %v1209_v58 = vmov 256.0  }
  0x41   :  { %583 = vmatpush.bf16.msrb.mxu2 %v908_v14  ;;  %v865_v9 = vld [vmem:[#allocation5 + $0x108] sm:$0xf0]  ;;  %v1041_v10 = vld [vmem:[#allocation5 + $0x184] sm:$0xf]  ;;  %v804_v13 = vor.u32 %v1009_v5, %v801_v7  ;;  %1067 = vrcp.f32 %v1209_v58  ;;  %s1210_s2 = smov [#allocation10]   ;;  %s702_s13 = sshll.u32 %s1280_s4, 4  ;;  %s703_s13 = int_to_ptr.hbm [resolvable:$true] %s702_s13 }
  0x42   :  { %597 = vmatpush.bf16.msrb.mxu3 %v972_v18  ;;  %v929_v11 = vld [vmem:[#allocation5 + $0x188] sm:$0xf0]  ;;  %v868_v14 = vor.u32 %v1025_v8, %v865_v9  ;;  %v147_v18 = vld [vmem:[#allocation8] ss:$4 sm:$0x3]  ;;  %s700_s3 = sshll.u32 %s1210_s2, 4  ;;  %s701_s3 = int_to_ptr.vmem [resolvable:$true] %s700_s3 }
  0x43   :  { %556 = vmatpush.bf16.msrb.mxu0 %v772_v24  ;;  %v932_v15 = vor.u32 %v1041_v10, %v929_v11  ;;  %v153_v21 = vperm.slane %v147_v18, 0 }
  0x44   :  { %570 = vmatpush.bf16.msrb.mxu1 %v836_v25  ;;  %v154_v25 = vperm.slane %v147_v18, 1 }
  0x45   :  { %584 = vmatpush.bf16.msrb.mxu2 %v900_v26 }
  0x46   :  { %598 = vmatpush.bf16.msrb.mxu3 %v964_v30 }
  0x47   :  { %557 = vmatpush.bf16.msrb.mxu0 %v764_v36  ;;  %v1068_v59 = vpop.eup %1067 }
  0x48   :  { %571 = vmatpush.bf16.msrb.mxu1 %v828_v37  ;;  %v609_v37 = vld [vmem:[#allocation7] sm:$0xff]  ;;  %v624_v60 = vmul.f32 256.0, %v1068_v59  ;;  %vm628_vm0 = vweird.f32 %v1068_v59 }
  0x49   :  { %585 = vmatpush.bf16.msrb.mxu2 %v892_v38  ;;  %v610_v38 = vld [vmem:[#allocation7 + $0x8] sm:$0xff] }
  0x4a   :  { %599 = vmatpush.bf16.msrb.mxu3 %v956_v42 }
  0x4b   :  { %558 = vmatpush.bf16.msrb.mxu0 %v756_v48 }
  0x4c   :  { %572 = vmatpush.bf16.msrb.mxu1 %v820_v49 }
  0x4d   :  { %586 = vmatpush.bf16.msrb.mxu2 %v884_v50  ;;  %v611_v50 = vld [vmem:[#allocation7 + $0x10] sm:$0xff] }
  0x4e   :  { %600 = vmatpush.bf16.msrb.mxu3 %v948_v54 }
  0x4f   :  { %559 = vmatpush.bf16.msrb.mxu0 %v748_v63  ;;  %v625_v63 = vsub.f32 1.0, %v624_v60 }
  0x50   :  { %573 = vmatpush.bf16.msrb.mxu1 %v812_v1 }
  0x51   :  { %587 = vmatpush.bf16.msrb.mxu2 %v876_v2  ;;  %v626_v1 = vmul.f32 %v1068_v59, %v625_v63 }
  0x52   :  { %601 = vmatpush.bf16.msrb.mxu3 %v940_v6 }
  0x53   :  { %560 = vmatpush.bf16.msrb.mxu0 %v740_v12  ;;  %v627_v2 = vadd.f32 %v1068_v59, %v626_v1 }
  0x54   :  { %574 = vmatpush.bf16.msrb.mxu1 %v804_v13 }
  0x55   :  { %588 = vmatpush.bf16.msrb.mxu2 %v868_v14  ;;  %v629_v3 = vsel %vm628_vm0, %v1068_v59, %v627_v2 }
  0x56   :  { %602 = vmatpush.bf16.msrb.mxu3 %v932_v15  ;;  %561 = vmatmul.bf16.vlgmr.msrb.gmra.mxu0 %v1256_v61 }
  0x57   :  { %575 = vmatmul.bf16.vlgmr.msrb.gmra.mxu1 %v1260_v0 }
  0x58   :  { %589 = vmatmul.bf16.vlgmr.msrb.gmra.mxu2 %v1254_v55 }
  0x59   :  { %603 = vmatmul.bf16.vlgmr.msrb.gmra.mxu3 %v1258_v62 }
  0xb3   :  { %v506_v16 = vpop.f32.mrf.mxu0 }
  0xb4   :  { %v520_v17 = vpop.f32.mrf.mxu1  ;;  %v507_v24 = vadd.f32 %v506_v16, %v153_v21 }
  0xb6   :  { %v521_v27 = vadd.f32 %v520_v17, %v507_v24 }
  0xbb   :  { %v534_v19 = vpop.f32.mrf.mxu2  ;;  %v508_v22 = vpop.f32.mrf.mxu0 }
  0xbc   :  { %v548_v20 = vpop.f32.mrf.mxu3  ;;  %v522_v23 = vpop.f32.mrf.mxu1  ;;  %v535_v30 = vadd.f32 %v534_v19, %v521_v27  ;;  %v509_v55 = vadd.f32 %v508_v22, %v153_v21 }
  0xbe   :  { %v549_v32 = vadd.f32 %v548_v20, %v535_v30  ;;  %v523_v33 = vadd.f32 %v522_v23, %v509_v55  ;;  %v151_v55 = vld [vmem:[#allocation8 + $0x2] ss:$4 sm:$0x3] }
  0xc0   :  { %v613_v42 = vadd.f32 %v609_v37, %v549_v32  ;;  %v685_v37 = vperm.slane %v151_v55, 1 }
  0xc3   :  { %v536_v26 = vpop.f32.mrf.mxu2 }
  0xc4   :  { %v550_v28 = vpop.f32.mrf.mxu3  ;;  %v537_v41 = vadd.f32 %v536_v26, %v523_v33 }
  0xc6   :  { %v551_v48 = vadd.f32 %v550_v28, %v537_v41  ;;  %v149_v28 = vld [vmem:[#allocation8 + $0x1] ss:$4 sm:$0x3] }
  0xc8   :  { %v615_v54 = vadd.f32 %v611_v50, %v551_v48 }
  0xd3   :  { %v562_v61 = vpop.f32.mrf.mxu0 }
  0xd4   :  { %v563_v29 = vadd.f32 %v562_v61, %v154_v25  ;;  %v576_v0 = vpop.f32.mrf.mxu1 }
  0xd6   :  { %v577_v31 = vadd.f32 %v576_v0, %v563_v29 }
  0xdb   :  { %v590_v62 = vpop.f32.mrf.mxu2  ;;  %v564_v36 = vpop.f32.mrf.mxu0 }
  0xdc   :  { %v591_v34 = vadd.f32 %v590_v62, %v577_v31  ;;  %v604_v35 = vpop.f32.mrf.mxu3  ;;  %v565_v40 = vadd.f32 %v564_v36, %v154_v25  ;;  %v578_v44 = vpop.f32.mrf.mxu1  ;;  %v675_v31 = vperm.slane %v149_v28, 0  ;;  %v676_v62 = vperm.slane %v149_v28, 1 }
  0xdd   :  { %v684_v36 = vperm.slane %v151_v55, 0 }
  0xde   :  { %v605_v39 = vadd.f32 %v604_v35, %v591_v34  ;;  %v579_v45 = vadd.f32 %v578_v44, %v565_v40 }
  0xe0   :  { %v614_v43 = vadd.f32 %v610_v38, %v605_v39 }
  0xe2   :  { %v617_v46 = vadd.f32 %v614_v43, %v613_v42 }
  0xe3   :  { %v592_v47 = vpop.f32.mrf.mxu2 }
  0xe4   :  { %v593_v49 = vadd.f32 %v592_v47, %v579_v45  ;;  %618 = vadd.xlane.f32.xlu0 %v617_v46  ;;  %v606_v51 = vpop.f32.mrf.mxu3 }
  0xe6   :  { %v607_v53 = vadd.f32 %v606_v51, %v593_v49 }
  0xe8   :  { %v616_v56 = vadd.f32 %v612_v52, %v607_v53 }
  0xea   :  { %v620_v57 = vadd.f32 %v616_v56, %v615_v54 }
  0xec   :  { %621 = vadd.xlane.f32.xlu0 %v620_v57 }
 0x157   :  { %v619_v4 = vpop.xlane.xlu0 %618 }
 0x158   :  { %v630_v5 = vmul.f32 %v629_v3, %v619_v4 }
 0x15a   :  { %v632_v6 = vsub.f32 %v613_v42, %v630_v5  ;;  %v633_v7 = vsub.f32 %v614_v43, %v630_v5 }
 0x15c   :  { %v636_v8 = vmul.f32 %v632_v6, %v632_v6  ;;  %v637_v9 = vmul.f32 %v633_v7, %v633_v7 }
 0x15e   :  { %v640_v10 = vadd.f32 %v637_v9, %v636_v8 }
 0x15f   :  { %v622_v11 = vpop.xlane.xlu0 %621 }
 0x160   :  { %v631_v12 = vmul.f32 %v629_v3, %v622_v11  ;;  %641 = vadd.xlane.f32.xlu1 %v640_v10 }
 0x162   :  { %v634_v13 = vsub.f32 %v615_v54, %v631_v12  ;;  %v635_v14 = vsub.f32 %v616_v56, %v631_v12 }
 0x164   :  { %v638_v15 = vmul.f32 %v634_v13, %v634_v13  ;;  %v639_v16 = vmul.f32 %v635_v14, %v635_v14 }
 0x166   :  { %v643_v17 = vadd.f32 %v639_v16, %v638_v15 }
 0x168   :  { %644 = vadd.xlane.f32.xlu1 %v643_v17 }
 0x1d3   :  { %v642_v18 = vpop.xlane.xlu1 %641 }
 0x1d4   :  { %v646_v19 = vmul.f32 %v642_v18, %v629_v3 }
 0x1d6   :  { %v648_v20 = vadd.f32 1e-12, %v646_v19 }
 0x1d8   :  { %1069 = vrsqrt.f32 %v648_v20  ;;  %vm656_vm2 = vweird.f32 %v648_v20 }
 0x1db   :  { %v645_v21 = vpop.xlane.xlu1 %644 }
 0x1dc   :  { %v647_v22 = vmul.f32 %v645_v21, %v629_v3 }
 0x1de   :  { %v1070_v23 = vpop.eup %1069  ;;  %v649_v24 = vadd.f32 1e-12, %v647_v22 }
 0x1df   :  { %v651_v25 = vmul.f32 %v1070_v23, %v648_v20  ;;  %vm657_vm1 = vweird.f32 %v1070_v23 }
 0x1e0   :  { %1071 = vrsqrt.f32 %v649_v24  ;;  %vm658_vm3 = vmor %vm656_vm2, %vm657_vm1  ;;  %vm666_vm5 = vweird.f32 %v649_v24 }
 0x1e1   :  { %v652_v26 = vmul.f32 %v1070_v23, %v651_v25 }
 0x1e3   :  { %v653_v27 = vmul.f32 0.5, %v652_v26 }
 0x1e5   :  { %v654_v61 = vsub.f32 1.5, %v653_v27 }
 0x1e6   :  { %v1072_v29 = vpop.eup %1071 }
 0x1e7   :  { %v655_v0 = vmul.f32 %v1070_v23, %v654_v61  ;;  %v661_v30 = vmul.f32 %v1072_v29, %v649_v24  ;;  %vm667_vm4 = vweird.f32 %v1072_v29 }
 0x1e8   :  { %vm668_vm6 = vmor %vm666_vm5, %vm667_vm4 }
 0x1e9   :  { %v659_v32 = vsel %vm658_vm3, %v1070_v23, %v655_v0  ;;  %v662_v33 = vmul.f32 %v1072_v29, %v661_v30 }
 0x1ea   :  { %v670_v34 = vmul.f32 %v659_v32, %v632_v6  ;;  %v671_v35 = vmul.f32 %v659_v32, %v633_v7 }
 0x1eb   :  { %v663_v38 = vmul.f32 0.5, %v662_v33 }
 0x1ec   :  { %v679_v39 = vmul.f32 %v675_v31, %v670_v34  ;;  %v680_v40 = vmul.f32 %v676_v62, %v671_v35 }
 0x1ed   :  { %v664_v41 = vsub.f32 1.5, %v663_v38 }
 0x1ee   :  { %v688_v42 = vadd.f32 %v684_v36, %v679_v39  ;;  %v689_v43 = vadd.f32 %v685_v37, %v680_v40 }
 0x1ef   :  { %v665_v44 = vmul.f32 %v1072_v29, %v664_v41 }
 0x1f0   :  { %692 = vst [vmem:[#allocation10] sm:$0xff] %v688_v42 }
 0x1f1   :  { %v669_v45 = vsel %vm668_vm6, %v1072_v29, %v665_v44  ;;  %693 = vst [vmem:[#allocation10 + $0x8] sm:$0xff] %v689_v43 }
 0x1f2   :  { %v672_v46 = vmul.f32 %v669_v45, %v634_v13  ;;  %v673_v47 = vmul.f32 %v669_v45, %v635_v14 }
 0x1f4   :  { %v681_v48 = vmul.f32 %v675_v31, %v672_v46  ;;  %v682_v49 = vmul.f32 %v676_v62, %v673_v47 }
 0x1f6   :  { %v690_v50 = vadd.f32 %v684_v36, %v681_v48  ;;  %v691_v51 = vadd.f32 %v685_v37, %v682_v49 }
 0x1f8   :  { %694 = vst [vmem:[#allocation10 + $0x10] sm:$0xff] %v690_v50 }
 0x1f9   :  { %695 = vst [vmem:[#allocation10 + $0x18] sm:$0xff] %v691_v51 }
 0x1fa   :  { %708 = dma.vmem_to_hbm [thread:$0]  %s701_s3, 512, %s703_s13, [#allocation4], %s1205_s27, %s1205_s27, %s1206_s28  }
 0x1fb   :  { %1199 = dma.done.wait [#allocation4], 512  }
 0x1fc   :  { %1200 = vsyncadd [#allocation4], 4294966784 }
 0x1fd   :  { %713 = vsyncpa [#allocation3], 1 }
 0x1fe   :  { %714 = vsyncpa [#allocation6], 1 }
 0x1ff   :  { %715 = vsyncpa [#allocation9], 1 }
 0x200   :  { %716 = vsyncpa [#allocation4], 1 }

</bundles_post_ra>
